<compile_context>
chip_gen: v6e
topology: v6e:2x2x1
jax: 0.10.0
libtpu: 0.0.40
codegen_flags: <defaults>
</compile_context>

<pallas_src>
import math

import jax
import jax.numpy as jnp
from jax import lax
from jax.experimental import pallas as pl
from jax.experimental.pallas import tpu as pltpu


def _round_up(x: int, m: int) -> int:
    return (x + m - 1) // m * m


# --------------------------- gate logits (fp32) ------------------------------


def gate_matmul(tokens, gate_w_t_f32, tm):
    """tokens: (Tp, H) original dtype (cast to f32 inside); w: (H, E) f32."""
    Tp, H = tokens.shape
    E = gate_w_t_f32.shape[1]

    def kernel(x_ref, w_ref, o_ref):
        x = x_ref[...].astype(jnp.float32)           # cast in-kernel, no HBM f32 copy
        o_ref[...] = jnp.dot(x, w_ref[...], preferred_element_type=jnp.float32)

    return pl.pallas_call(
        kernel,
        grid=(Tp // tm,),
        in_specs=[pl.BlockSpec((tm, H), lambda i: (i, 0)),
                  pl.BlockSpec((H, E), lambda i: (0, 0))],
        out_specs=pl.BlockSpec((tm, E), lambda i: (i, 0)),
        out_shape=jax.ShapeDtypeStruct((Tp, E), jnp.float32),
        compiler_params=pltpu.CompilerParams(dimension_semantics=("parallel",)),
    )(tokens, gate_w_t_f32)


# -------------------- per-expert ReLU MLP (bf16 MXU, f32 acc) ----------------


def moe_experts(dispatched, wi_cd, wo_cd, *, i_tile):
    """relu(x @ wi) @ wo per expert.

    dispatched : (E, c_pad, H) bf16 — already gathered per (expert, slot); a
        regular BlockSpec input so Pallas double-buffers it across experts.
    wi_cd      : (E, H, I) bf16,  wo_cd: (E, I, H) bf16.
    Returns (E, c_pad, H) bf16 expert outputs.
    """
    E, c_pad, H = dispatched.shape
    I = wi_cd.shape[2]
    ti = i_tile if (I % i_tile == 0 and I >= i_tile) else I
    n_it = I // ti

    def kernel(x_ref, wi_ref, wo_ref, o_ref, acc_ref):
        it = pl.program_id(1)

        @pl.when(it == 0)
        def _():
            acc_ref[...] = jnp.zeros_like(acc_ref)   # f32 scratch accumulator

        x = x_ref[0]                                                # (c_pad, H) bf16
        mid = jnp.dot(x, wi_ref[0], preferred_element_type=jnp.float32)
        mid = jnp.maximum(mid, 0.0).astype(x.dtype)                 # ReLU -> bf16
        acc_ref[...] += jnp.dot(mid, wo_ref[0],
                                preferred_element_type=jnp.float32)

        @pl.when(it == pl.num_programs(1) - 1)
        def _():
            o_ref[0] = acc_ref[...].astype(o_ref.dtype)             # single bf16 store

    flops = 4 * E * c_pad * H * I
    bytes_accessed = (E * c_pad * H * dispatched.dtype.itemsize     # dispatched in
                      + E * H * I * wi_cd.dtype.itemsize            # wi
                      + E * I * H * wo_cd.dtype.itemsize            # wo
                      + E * c_pad * H * 2)                          # bf16 output

    bs = dispatched.dtype.itemsize
    vmem_need = (2 * c_pad * H * bs                  # dispatched, double-buffered
                 + 2 * (H * ti + ti * H) * bs        # wi/wo tiles, double-buffered
                 + c_pad * H * 4                     # f32 accumulator scratch
                 + 2 * c_pad * H * 2)                # bf16 output block, double-buffered
    cp = dict(dimension_semantics=("parallel", "arbitrary"))
    if 2 * vmem_need > 32 * 2**20:
        # only raise the scoped limit when needed; 64 MiB is safe on v5e/v6e/v7x
        cp["vmem_limit_bytes"] = int(min(64 * 2**20, 2 * vmem_need))

    return pl.pallas_call(
        kernel,
        grid=(E, n_it),
        in_specs=[pl.BlockSpec((1, c_pad, H), lambda e, i: (e, 0, 0)),
                  pl.BlockSpec((1, H, ti), lambda e, i: (e, 0, i)),
                  pl.BlockSpec((1, ti, H), lambda e, i: (e, i, 0))],
        out_specs=pl.BlockSpec((1, c_pad, H), lambda e, i: (e, 0, 0)),
        out_shape=jax.ShapeDtypeStruct((E, c_pad, H), jnp.bfloat16),
        scratch_shapes=[pltpu.VMEM((c_pad, H), jnp.float32)],
        compiler_params=pltpu.CompilerParams(**cp),
        cost_estimate=pl.CostEstimate(flops=flops, transcendentals=0,
                                      bytes_accessed=bytes_accessed),
    )(dispatched, wi_cd, wo_cd)


# ---------------------- combine: scale + mask + cast --------------------------


def moe_combine(w_col, gathered, *, out_dtype, t_tile):
    """out[t] = w[t] * gathered[t] (top-1 combine); dropped tokens exactly 0.

    w_col    : (Tp, 1) f32 (0 for dropped / padded tokens).
    gathered : (Tp, H) bf16 expert-output rows already gathered per token.
    """
    Tp, H = gathered.shape

    def kernel(w_ref, g_ref, o_ref):
        w = w_ref[...]                                              # (tt, 1) f32
        g = g_ref[...].astype(jnp.float32)                          # (tt, H)
        out = jnp.where(w > 0.0, w * g, 0.0)                        # no 0*inf NaNs
        o_ref[...] = out.astype(o_ref.dtype)                        # cast in-kernel

    return pl.pallas_call(
        kernel,
        grid=(Tp // t_tile,),
        in_specs=[pl.BlockSpec((t_tile, 1), lambda i: (i, 0)),
                  pl.BlockSpec((t_tile, H), lambda i: (i, 0))],
        out_specs=pl.BlockSpec((t_tile, H), lambda i: (i, 0)),
        out_shape=jax.ShapeDtypeStruct((Tp, H), out_dtype),
        compiler_params=pltpu.CompilerParams(dimension_semantics=("parallel",)),
    )(w_col, gathered)


# ------------------------- router glue (plain JAX) ---------------------------


def get_capacity(num_tokens, num_experts, capacity_factor, min_capacity):
    # Top1Router.get_capacity (k=1)
    capacity = math.floor(1 * capacity_factor * num_tokens / num_experts)
    capacity += capacity % 2
    capacity = max(capacity, min_capacity)
    assert capacity > 0
    return capacity


def top1_route(gate_logits, capacity):
    """Top1Router (select_policy='first', no noise, drop_tks)."""
    T, E = gate_logits.shape
    probs = jax.nn.softmax(gate_logits, axis=-1)
    top1 = jnp.argmax(gate_logits, axis=-1)
    oh = jax.nn.one_hot(top1, E, dtype=jnp.int32)
    ranks = jnp.cumsum(oh, axis=0) - 1              # moe_cumsum (0-based position)
    pos = jnp.sum(oh * ranks, axis=-1)              # rank of token within its expert
    kept = pos < capacity                           # capacity drop
    top_prob = jnp.take_along_axis(probs, top1[:, None], axis=-1)[:, 0]
    weight = jnp.where(kept, top_prob, 0.0).astype(jnp.float32)
    return top1.astype(jnp.int32), pos.astype(jnp.int32), kept, weight


# ----------------------------- SparseMLP forward -----------------------------


def sparse_mlp_forward(inputs, gate_weight, wi, wo, *,
                       capacity_factor=1.25, min_capacity=4,
                       t_tile=256, i_tile=512,
                       compute_dtype=jnp.bfloat16):
    B, S, H = inputs.shape
    E, _, I = wi.shape
    tokens = inputs.reshape(-1, H)
    T = tokens.shape[0]

    # 1) gate logits in fp32 (cast happens inside the kernel)
    tm = min(t_tile, _round_up(T, 8))
    Tp = _round_up(T, tm)
    tok_pad = tokens if Tp == T else jnp.pad(tokens, ((0, Tp - T), (0, 0)))
    gate_logits = gate_matmul(tok_pad, gate_weight.astype(jnp.float32).T, tm)[:T]

    # 2) top-1 routing (control glue stays in plain JAX)
    capacity = get_capacity(T, E, capacity_factor, min_capacity)
    c_pad = _round_up(capacity, 16)      # bf16 sublane packing; routing uses capacity
    top1, pos, kept, w_tok = top1_route(gate_logits, capacity)

    flat_slot = top1 * c_pad + pos                                  # (T,)
    dest = jnp.where(kept, flat_slot, E * c_pad)                    # dropped -> overflow
    slot_to_token = jnp.zeros((E * c_pad + 1,), jnp.int32).at[dest].set(
        jnp.arange(T, dtype=jnp.int32))[: E * c_pad]                # empty slots -> token 0

    # 3) coalesced dispatch gather (XLA) + per-expert ReLU MLP (Pallas)
    tokens_cd = tokens.astype(compute_dtype)
    dispatched = jnp.take(tokens_cd, slot_to_token, axis=0).reshape(E, c_pad, H)
    expert_out = moe_experts(dispatched,
                             wi.astype(compute_dtype),
                             wo.astype(compute_dtype),
                             i_tile=i_tile)                          # (E, c_pad, H) bf16

    # 4) combine = coalesced per-token row gather (XLA) + Pallas scale/mask/cast
    tt = min(t_tile, _round_up(T, 8))
    Tp2 = _round_up(T, tt)
    src = jnp.where(kept, flat_slot, 0).astype(jnp.int32)           # dropped -> row 0, w=0
    src_pad = src if Tp2 == T else jnp.pad(src, (0, Tp2 - T))
    w_pad = (w_tok if Tp2 == T else jnp.pad(w_tok, (0, Tp2 - T))).reshape(Tp2, 1)
    gathered = jnp.take(expert_out.reshape(E * c_pad, H), src_pad, axis=0)
    out = moe_combine(w_pad, gathered, out_dtype=inputs.dtype, t_tile=tt)[:T]
    return out.reshape(B, S, H)


# ------------------------------- reference -----------------------------------


def reference_forward(inputs, gate_weight, wi, wo, *,
                      capacity_factor=1.25, min_capacity=4,
                      compute_dtype=jnp.bfloat16):
    """Dense-mask formulation of the PyTorch module (dispatch/combine matmuls),
    with the expert MLP at the same bf16-operand / f32-accumulate precision as
    the Pallas path."""
    B, S, H = inputs.shape
    tokens = inputs.reshape(-1, H).astype(jnp.float32)
    T = tokens.shape[0]
    E = gate_weight.shape[0]
    hi = jax.lax.Precision.HIGHEST
    gate_out = jnp.dot(tokens, gate_weight.astype(jnp.float32).T, precision=hi)
    capacity = get_capacity(T, E, capacity_factor, min_capacity)

    probs = jax.nn.softmax(gate_out, axis=-1)
    top1 = jnp.argmax(gate_out, axis=-1)
    mask = jax.nn.one_hot(top1, E, dtype=jnp.int32)
    ranks = jnp.cumsum(mask, axis=0) - 1
    mask = mask * (ranks < capacity).astype(jnp.int32)
    rank_per_tok = jnp.sum(mask * ranks, axis=-1)
    ranks_oh = jax.nn.one_hot(rank_per_tok, capacity, dtype=jnp.float32)
    weight = mask.astype(jnp.float32) * probs
    cw = weight[:, :, None] * ranks_oh[:, None, :]                  # (T, E, C)
    sec_mask = (cw != 0.0).astype(jnp.float32)

    disp = jnp.einsum("tec,th->ech", sec_mask, tokens, precision=hi)
    mid = lax.dot_general(disp.astype(compute_dtype), wi.astype(compute_dtype),
                          (((2,), (1,)), ((0,), (0,))),
                          preferred_element_type=jnp.float32)
    mid = jnp.maximum(mid, 0.0)
    eo = lax.dot_general(mid.astype(compute_dtype), wo.astype(compute_dtype),
                         (((2,), (1,)), ((0,), (0,))),
                         preferred_element_type=jnp.float32)
    ans = jnp.dot(cw.reshape(T, -1), eo.reshape(-1, H), precision=hi)
    return ans.reshape(inputs.shape)


# --------------------------------- main ---------------------------------------


if __name__ == "__main__":
    # small shapes: batch=2, seq=8 -> T=16 tokens, hidden=32, intermediate=64, 4 experts
    B, S, H, I, E = 2, 8, 32, 64, 4

    key = jax.random.PRNGKey(0)
    k_in, k_gate, k_wi, k_wo = jax.random.split(key, 4)

    inputs = jax.random.normal(k_in, (B, S, H), dtype=jnp.float32)
    # deterministic init mirroring SparseMLP.reset_parameters / MLPExperts init std
    gate_weight = math.sqrt(0.1 / H) * jax.random.normal(k_gate, (E, H), dtype=jnp.float32)
    wi = math.sqrt(0.1 / H) * jax.random.normal(k_wi, (E, H, I), dtype=jnp.float32)
    wo = math.sqrt(0.1 / I) * jax.random.normal(k_wo, (E, I, H), dtype=jnp.float32)

    out = jax.block_until_ready(sparse_mlp_forward(inputs, gate_weight, wi, wo))
    ref = jax.block_until_ready(reference_forward(inputs, gate_weight, wi, wo))

    assert out.shape == inputs.shape
    max_diff = float(jnp.max(jnp.abs(out - ref)))
    assert jnp.allclose(out, ref, atol=2e-3, rtol=2e-2), (
        f"mismatch vs JAX reference, max abs diff = {max_diff}")

    print("KERNEL_OK")
</pallas_src>

<mosaic_0001>
module attributes {stable_mosaic.version = 11 : i64} {
  func.func @kernel(%arg0: i32, %arg1: memref<16x32xf32, #tpu.memory_space<vmem>>, %arg2: memref<32x4xf32, #tpu.memory_space<vmem>>, %arg3: memref<16x4xf32, #tpu.memory_space<vmem>>) attributes {dimension_semantics = [#tpu.dimension_semantics<parallel>], iteration_bounds = array<i64: 1>, scalar_prefetch = 0 : i64, scratch_operands = 0 : i64, tpu.core_type = #tpu.core_type<tc>, window_params = [{transform_indices = @transform_0, window_bounds = array<i64: 16, 32>}, {pipeline_mode = #tpu.pipeline_mode<synchronous>, transform_indices = @transform_1, window_bounds = array<i64: 32, 4>}, {transform_indices = @transform_2, window_bounds = array<i64: 16, 4>}]} {
    %c0 = arith.constant 0 : index
    %c0_0 = arith.constant 0 : index
    %0 = vector.load %arg1[%c0, %c0_0] : memref<16x32xf32, #tpu.memory_space<vmem>>, vector<16x32xf32>
    %c0_1 = arith.constant 0 : index
    %c0_2 = arith.constant 0 : index
    %1 = vector.load %arg2[%c0_1, %c0_2] : memref<32x4xf32, #tpu.memory_space<vmem>>, vector<32x4xf32>
    %cst = arith.constant dense<0.000000e+00> : vector<16x4xf32>
    %2 = tpu.matmul %0, %1, %cst {dimension_numbers = #tpu.dot_dimension_numbers<[1], [0], [0], [1], [0, 0, 1, 1], [], []>} : vector<16x32xf32>, vector<32x4xf32>, vector<16x4xf32> -> vector<16x4xf32>
    %c0_3 = arith.constant 0 : index
    %c0_4 = arith.constant 0 : index
    %3 = vector.load %arg3[%c0_3, %c0_4] : memref<16x4xf32, #tpu.memory_space<vmem>>, vector<16x4xf32>
    tpu.vector_store %arg3[%c0_3, %c0_4], %2 {strides = array<i32>} : memref<16x4xf32, #tpu.memory_space<vmem>>, vector<16x4xf32>,
    return
  }
  func.func @transform_0(%arg0: i32) -> (i32, i32) {
    %c0_i32 = arith.constant 0 : i32
    %c0_i32_0 = arith.constant 0 : i32
    return %arg0, %c0_i32 : i32, i32
  }
  func.func @transform_1(%arg0: i32) -> (i32, i32) {
    %c0_i32 = arith.constant 0 : i32
    %c0_i32_0 = arith.constant 0 : i32
    %c0_i32_1 = arith.constant 0 : i32
    return %c0_i32, %c0_i32_0 : i32, i32
  }
  func.func @transform_2(%arg0: i32) -> (i32, i32) {
    %c0_i32 = arith.constant 0 : i32
    %c0_i32_0 = arith.constant 0 : i32
    return %arg0, %c0_i32 : i32, i32
  }
}

</mosaic_0001>

<bundles_post_ra>
// kernel: tpu_custom_call.1
= control target key start
LH: loop header
LB: loop body
LE: loop exit
PB: predicated region body
PF: predicated region fallthrough
CT: control target
= control target key end

     0   :  { %vm17_vm0 = vcmask 261120   ;;  %vm99_vm1 = vcmask 31744   ;;  %s166_s1 = inlined_call_operand.vmem [shape: f32[32,4], index: 1, kind: input, shape index: {}]   ;;  %s167_s0 = inlined_call_operand.vmem [shape: f32[16,32], index: 0, kind: input, shape index: {}]   ;;  %s168_s2 = inlined_call_operand.vmem [shape: f32[16,4], index: 2, kind: output, shape index: {}]  }
   0x1   :  { %v16_v0 = vld [vmem:[%s166_s1 + $0x18] sm:$0xff]  ;;  %v15_v1 = vld [vmem:[%s166_s1 + $0x10] sm:$0xff]  ;;  %v11_v2 = vld [vmem:[%s167_s0] sm:$0xff] }
   0x2   :  { %114 = vmatprep.subr.mxu0 %v16_v0  ;;  %v14_v3 = vld [vmem:[%s166_s1 + $0x8] sm:$0xff]  ;;  %122 = vmatprep.mubr.msk.f32.mxu0 %vm17_vm0, %v11_v2  ;;  %v13_v4 = vld [vmem:[%s166_s1] sm:$0xff] }
   0x3   :  { %115 = vmatpush3.msra.mxu0 %v16_v0  ;;  %v12_v5 = vld [vmem:[%s167_s0 + $0x8] sm:$0xff] }
   0x4   :  { %116 = vmatprep.subr.mxu0 %v15_v1 }
   0x5   :  { %117 = vmatpush3.msra.mxu0 %v15_v1 }
   0x6   :  { %118 = vmatprep.subr.mxu0 %v14_v3 }
   0x7   :  { %119 = vmatpush3.msra.mxu0 %v14_v3 }
   0x8   :  { %120 = vmatprep.subr.mxu0 %v13_v4 }
   0x9   :  { %121 = vmatpush3.msra.mxu0 %v13_v4 }
   0xa   :  { %123 = vmatmul.mubr.msk.f32.vlgmr.msra.gmra.mxu0 %vm17_vm0, %v12_v5 }
  0xca   :  { %v124_v6 = vpop.f32.mrf.mxu0 }
  0xcb   :  { %101 = vst.msk [vmem:[%s168_s2 + $0x8] sm:$0xff] %vm99_vm1, %v124_v6 }
  0xcc   :  { %v90_v7 = vpop.f32.mrf.mxu0 }
  0xcd   :  { %100 = vst.msk [vmem:[%s168_s2] sm:$0xff] %vm99_vm1, %v90_v7 }

</bundles_post_ra>
